<compile_context>
chip_gen: v7x
topology: tpu7x:2x2x1
jax: 0.10.0
libtpu: 0.0.40
codegen_flags: <defaults>
</compile_context>

<pallas_src>
import math
import functools

import jax
import jax.numpy as jnp
from jax import lax
from jax.experimental import pallas as pl
from jax.experimental.pallas import tpu as pltpu

# Keep the pure-JAX reference at full f32 matmul precision so the comparison against the
# (f32-accumulating) Pallas kernels is meaningful.
jax.config.update("jax_default_matmul_precision", "highest")


def _round_up(x, m):
    return ((x + m - 1) // m) * m


# ---------------------- Kernel 1: fused GCNConv K|V aggregation ----------------------
# out = adj @ XW + b, XW = x @ [wk*scale | wv] precomputed in the wrapper.  Grid =
# (row blocks "parallel", N-contraction blocks "arbitrary") with an f32 VMEM accumulator;
# bias is folded into the accumulator init so the final step is a plain store.

def gcn_agg_kernel(adj_ref, xw_ref, b_ref, out_ref, acc_ref):
    @pl.when(pl.program_id(1) == 0)
    def _init():
        acc_ref[...] = jnp.broadcast_to(b_ref[...], acc_ref.shape)

    acc_ref[...] += jnp.dot(adj_ref[...], xw_ref[...],
                            preferred_element_type=jnp.float32)

    @pl.when(pl.program_id(1) == pl.num_programs(1) - 1)
    def _store():
        out_ref[...] = acc_ref[...]


def gcn_kv(x, adj, w_kv, b_kv, *, row_tile=1024, k_tile=2048,
           stream_dtype=jnp.float32, vmem_cap_bytes=64 * 1024 * 1024):
    """Returns (N, 2*dim_V): [:, :dim_V] = scaled K branch, [:, dim_V:] = V branch."""
    N = x.shape[0]
    C = w_kv.shape[1]

    # Lane-dense output: pad the fused output columns up to a multiple of 128.
    C_pad = _round_up(C, 128)

    # Tiles (generation-safe defaults); pad N so the tiles always divide exactly
    # instead of silently falling back to one full-N block.
    tm = min(row_tile, _round_up(N, 8))
    tk = min(k_tile, _round_up(N, 128))
    Nm = _round_up(N, tm)
    Nk = _round_up(N, tk)

    # Hoisted projection: XW = x @ [wk*scale | wv]; zero padding is inert under matmul.
    xw = jnp.dot(x, w_kv, preferred_element_type=jnp.float32)
    xw = jnp.zeros((Nk, C_pad), jnp.float32).at[:N, :C].set(xw)
    b = jnp.zeros((1, C_pad), jnp.float32).at[:, :C].set(b_kv)
    adj_p = jnp.zeros((Nm, Nk), jnp.float32).at[:N, :N].set(adj)

    # Optional bf16 streaming of the N^2 adj (and XW) halves HBM bytes for the
    # bandwidth-bound stream (biggest win on v7x); accumulation stays f32.
    adj_p = adj_p.astype(stream_dtype)
    xw_s = xw.astype(stream_dtype)

    # VMEM budget derived from the actual tiles: double-buffered adj + XW inputs,
    # double-buffered output, accumulator, bias; capped at 64 MiB (v7x-safe).
    in_bytes = jnp.dtype(stream_dtype).itemsize
    need = (2 * tm * tk + 2 * tk * C_pad) * in_bytes \
         + (2 * tm * C_pad + tm * C_pad + 2 * C_pad) * 4
    vmem_limit = int(min(max(need * 5 // 4 + (4 << 20), 16 << 20), vmem_cap_bytes))

    out = pl.pallas_call(
        gcn_agg_kernel,
        out_shape=jax.ShapeDtypeStruct((Nm, C_pad), jnp.float32),
        grid=(Nm // tm, Nk // tk),
        in_specs=[
            pl.BlockSpec((tm, tk), lambda i, k: (i, k)),       # adj row/contraction tile
            pl.BlockSpec((tk, C_pad), lambda i, k: (k, 0)),    # hoisted XW tile
            pl.BlockSpec((1, C_pad), lambda i, k: (0, 0)),     # fused bias
        ],
        out_specs=pl.BlockSpec((tm, C_pad), lambda i, k: (i, 0)),
        scratch_shapes=[pltpu.VMEM((tm, C_pad), jnp.float32)],
        compiler_params=pltpu.CompilerParams(
            dimension_semantics=("parallel", "arbitrary"),
            vmem_limit_bytes=vmem_limit),
    )(adj_p, xw_s, b)
    return out[:N, :C]


# --------------------------- Kernel 2: MAB attention block ---------------------------

def _layernorm(x, gamma, beta, eps=1e-5):
    mu = jnp.mean(x, axis=-1, keepdims=True)
    var = jnp.mean((x - mu) ** 2, axis=-1, keepdims=True)
    return (x - mu) * lax.rsqrt(var + eps) * gamma + beta


def mab_attn_kernel(q_ref, k_ref, v_ref, bias_ref, wq_ref, wo_ref, vec_ref, o_ref,
                    *, num_heads):
    # Packed small params: rows = [bq, bo, ln0g, ln0b, ln1g, ln1b] -> one DMA.
    vecs = vec_ref[...]                       # (6, dim_V)
    bq, bo = vecs[0:1], vecs[1:2]
    ln0g, ln0b = vecs[2:3], vecs[3:4]
    ln1g, ln1b = vecs[4:5], vecs[5:6]

    q = q_ref[0]                              # (nq, dim_Q)
    K = k_ref[0]                              # (Np, dim_V); already scaled by 1/sqrt(dim_V)
    V = v_ref[0]                              # (Np, dim_V)
    bias = bias_ref[0]                        # (1, Np) == (1 - mask) * -1e9

    Q = jnp.dot(q, wq_ref[...], preferred_element_type=jnp.float32) + bq   # (nq, dim_V)

    dim_V = wq_ref.shape[1]
    dh = dim_V // num_heads
    qk_dims = (((1,), (1,)), ((), ()))        # contract feature dims: no K transpose

    # TODO(synk): for realistic nq/max_n, replace this unrolled per-head loop with a
    # head-batched dot_general and a kv-tiled online-softmax (flash) grid axis so K/V
    # stream through VMEM instead of being whole-block residents.
    outs = []
    for h in range(num_heads):
        cols = slice(h * dh, (h + 1) * dh)
        Qh, Kh, Vh = Q[:, cols], K[:, cols], V[:, cols]
        s = lax.dot_general(Qh, Kh, qk_dims,
                            preferred_element_type=jnp.float32) + bias      # (nq, Np)
        s = s - jnp.max(s, axis=-1, keepdims=True)
        p = jnp.exp(s)
        A = p / jnp.sum(p, axis=-1, keepdims=True)     # exact division (matches reference)
        outs.append(Qh + jnp.dot(A, Vh, preferred_element_type=jnp.float32))
    O = jnp.concatenate(outs, axis=-1)        # (nq, dim_V); assembled in values, stored once

    O = _layernorm(O, ln0g, ln0b)
    hidden = jnp.dot(O, wo_ref[...], preferred_element_type=jnp.float32) + bo
    O = O + jnp.maximum(hidden, 0.0)
    O = _layernorm(O, ln1g, ln1b)
    o_ref[0] = O


def mab_attention(Qd, Kd_scaled, Vd, bias, wq, wo, vecs, *, num_heads):
    B, nq, dim_Q = Qd.shape
    _, Np, dim_V = Kd_scaled.shape
    kern = functools.partial(mab_attn_kernel, num_heads=num_heads)
    return pl.pallas_call(
        kern,
        out_shape=jax.ShapeDtypeStruct((B, nq, dim_V), jnp.float32),
        grid=(B,),
        in_specs=[
            pl.BlockSpec((1, nq, dim_Q), lambda b: (b, 0, 0)),
            pl.BlockSpec((1, Np, dim_V), lambda b: (b, 0, 0)),
            pl.BlockSpec((1, Np, dim_V), lambda b: (b, 0, 0)),
            pl.BlockSpec((1, 1, Np), lambda b: (b, 0, 0)),
            pl.BlockSpec((dim_Q, dim_V), lambda b: (0, 0)),
            pl.BlockSpec((dim_V, dim_V), lambda b: (0, 0)),
            pl.BlockSpec((vecs.shape[0], dim_V), lambda b: (0, 0)),
        ],
        out_specs=pl.BlockSpec((1, nq, dim_V), lambda b: (b, 0, 0)),
        compiler_params=pltpu.CompilerParams(dimension_semantics=("parallel",)),
    )(Qd, Kd_scaled, Vd, bias, wq, wo, vecs)


# ----------------------------------- Glue / driver ----------------------------------

def build_norm_adj(edge_index, N):
    """Dense D^-1/2 (A + I) D^-1/2 a la PyG gcn_norm (add_self_loops=True)."""
    src, dst = edge_index
    A = jnp.zeros((N, N), jnp.float32).at[dst, src].add(1.0)
    A = A + jnp.eye(N, dtype=jnp.float32)
    deg = A.sum(axis=1)
    dinv = jnp.where(deg > 0, 1.0 / jnp.sqrt(deg), 0.0)
    return dinv[:, None] * A * dinv[None, :]


def to_dense_batch(nodes, batch, B, pad_n):
    N, D = nodes.shape
    counts = jnp.bincount(batch, length=B)
    ptr = jnp.concatenate([jnp.zeros((1,), jnp.int32),
                           jnp.cumsum(counts).astype(jnp.int32)])[:-1]
    pos = jnp.arange(N, dtype=jnp.int32) - ptr[batch]
    dense = jnp.zeros((B, pad_n, D), jnp.float32).at[batch, pos].set(nodes)
    mask = jnp.zeros((B, pad_n), jnp.float32).at[batch, pos].set(1.0)
    return dense, mask, pos


def reference_forward(Qin, x, adj, batch, B, max_n, p, num_heads):
    """Pure-JAX mirror of the torch MAB.forward (for validation)."""
    dim_V = p["wq"].shape[1]
    Kn = adj @ (x @ p["wk"]) + p["bk"][0]
    Vn = adj @ (x @ p["wv"]) + p["bv"][0]
    Kd, mask, _ = to_dense_batch(Kn, batch, B, max_n)
    Vd, _, _ = to_dense_batch(Vn, batch, B, max_n)
    Q = Qin @ p["wq"] + p["bq"][0]
    bias = (1.0 - mask) * -1000000000.0                     # (B, max_n)
    dh = dim_V // num_heads
    outs = []
    for h in range(num_heads):
        Qh = Q[:, :, h * dh:(h + 1) * dh]
        Kh = Kd[:, :, h * dh:(h + 1) * dh]
        Vh = Vd[:, :, h * dh:(h + 1) * dh]
        s = jnp.einsum("bqd,bkd->bqk", Qh, Kh) / math.sqrt(dim_V) + bias[:, None, :]
        A = jax.nn.softmax(s, axis=-1)
        outs.append(Qh + jnp.einsum("bqk,bkd->bqd", A, Vh))
    O = jnp.concatenate(outs, axis=-1)
    O = _layernorm(O, p["ln0g"][0], p["ln0b"][0])
    O = O + jax.nn.relu(O @ p["wo"] + p["bo"][0])
    O = _layernorm(O, p["ln1g"][0], p["ln1b"][0])
    return O


if __name__ == "__main__":
    # Small, deterministic problem.
    B, nq = 2, 4
    dim_Q, dim_K, dim_V, num_heads = 16, 8, 32, 4

    # Two graphs: graph 0 has 5 nodes (ring), graph 1 has 3 nodes (path).
    batch = jnp.array([0, 0, 0, 0, 0, 1, 1, 1], dtype=jnp.int32)
    N = int(batch.shape[0])
    max_n = 5                                  # true max nodes per graph
    Np = _round_up(max_n, 128)                 # lane-dense key length for the kernel
    src = jnp.array([0, 1, 1, 2, 2, 3, 3, 4, 4, 0, 5, 6, 6, 7], dtype=jnp.int32)
    dst = jnp.array([1, 0, 2, 1, 3, 2, 4, 3, 0, 4, 6, 5, 7, 6], dtype=jnp.int32)
    edge_index = jnp.stack([src, dst])         # (2, E)

    key = jax.random.PRNGKey(0)
    ks = jax.random.split(key, 10)
    Qin = jax.random.normal(ks[0], (B, nq, dim_Q), jnp.float32)
    x = jax.random.normal(ks[1], (N, dim_K), jnp.float32)

    params = {
        "wq": 0.1 * jax.random.normal(ks[2], (dim_Q, dim_V), jnp.float32),
        "bq": 0.1 * jax.random.normal(ks[3], (1, dim_V), jnp.float32),
        "wk": 0.1 * jax.random.normal(ks[4], (dim_K, dim_V), jnp.float32),
        "bk": 0.1 * jax.random.normal(ks[5], (1, dim_V), jnp.float32),
        "wv": 0.1 * jax.random.normal(ks[6], (dim_K, dim_V), jnp.float32),
        "bv": 0.1 * jax.random.normal(ks[7], (1, dim_V), jnp.float32),
        "wo": 0.1 * jax.random.normal(ks[8], (dim_V, dim_V), jnp.float32),
        "bo": 0.1 * jax.random.normal(ks[9], (1, dim_V), jnp.float32),
        "ln0g": jnp.ones((1, dim_V), jnp.float32),
        "ln0b": jnp.zeros((1, dim_V), jnp.float32),
        "ln1g": jnp.ones((1, dim_V), jnp.float32),
        "ln1b": jnp.zeros((1, dim_V), jnp.float32),
    }

    # TODO(synk): GCNConv's sparse scatter-based message passing is realised as a
    # dense normalized adjacency matmul (exact for these sizes).
    adj = build_norm_adj(edge_index, N)

    # Fold the 1/sqrt(dim_V) attention scale into the K branch (exact: K is linear in
    # wk/bk and only ever used inside the scores), then fuse K|V into one weight.
    scale = 1.0 / math.sqrt(dim_V)
    w_kv = jnp.concatenate([params["wk"] * scale, params["wv"]], axis=1)  # (dim_K, 2*dim_V)
    b_kv = jnp.concatenate([params["bk"] * scale, params["bv"]], axis=1)  # (1, 2*dim_V)

    # Kernel 1: fused GCNConv fc_k / fc_v aggregation (single pass over adj).
    # (Pass stream_dtype=jnp.bfloat16 to halve the adj HBM stream on v7x.)
    KV = gcn_kv(x, adj, w_kv, b_kv)
    Kn_scaled = KV[:, :dim_V]      # = (1/sqrt(dim_V)) * GCN_k(x)
    Vn = KV[:, dim_V:]

    # to_dense_batch packing (glue) with the key axis padded to 128 lanes; the -1e9
    # mask bias makes the padded keys inert.
    Kd, mask, _ = to_dense_batch(Kn_scaled, batch, B, Np)
    Vd, _, _ = to_dense_batch(Vn, batch, B, Np)
    bias = ((1.0 - mask) * -1000000000.0)[:, None, :]        # (B, 1, Np)

    # Pack the six (1, dim_V) vectors into one slab: [bq, bo, ln0g, ln0b, ln1g, ln1b].
    vecs = jnp.concatenate([params["bq"], params["bo"],
                            params["ln0g"], params["ln0b"],
                            params["ln1g"], params["ln1b"]], axis=0)      # (6, dim_V)

    # Kernel 2: the MAB attention block — one grid step per graph ("parallel" over B).
    O = mab_attention(Qin, Kd, Vd, bias, params["wq"], params["wo"], vecs,
                      num_heads=num_heads)
    O = jax.block_until_ready(O)

    O_ref = reference_forward(Qin, x, adj, batch, B, max_n, params, num_heads)
    assert O.shape == (B, nq, dim_V)
    err = float(jnp.max(jnp.abs(O - O_ref)))
    assert jnp.allclose(O, O_ref, rtol=1e-3, atol=1e-3), f"max abs err = {err}"
    print("KERNEL_OK")
</pallas_src>

<mosaic_0001>
module attributes {stable_mosaic.version = 11 : i64} {
  func.func @gcn_agg_kernel(%arg0: i32, %arg1: i32, %arg2: memref<8x128xf32, #tpu.memory_space<vmem>>, %arg3: memref<128x128xf32, #tpu.memory_space<vmem>>, %arg4: memref<1x128xf32, #tpu.memory_space<vmem>>, %arg5: memref<8x128xf32, #tpu.memory_space<vmem>>, %arg6: memref<8x128xf32, #tpu.memory_space<vmem>>) attributes {dimension_semantics = [#tpu.dimension_semantics<parallel>, #tpu.dimension_semantics<arbitrary>], iteration_bounds = array<i64: 1, 1>, scalar_prefetch = 0 : i64, scratch_operands = 1 : i64, tpu.core_type = #tpu.core_type<tc>, window_params = [{transform_indices = @transform_0, window_bounds = array<i64: 8, 128>}, {transform_indices = @transform_1, window_bounds = array<i64: 128, 128>}, {pipeline_mode = #tpu.pipeline_mode<synchronous>, transform_indices = @transform_2, window_bounds = array<i64: 1, 128>}, {transform_indices = @transform_3, window_bounds = array<i64: 8, 128>}]} {
    %c0_i32 = arith.constant 0 : i32
    %0 = arith.cmpi eq, %arg1, %c0_i32 : i32
    %1 = arith.extui %0 : i1 to i32
    %c0_i32_0 = arith.constant 0 : i32
    %2 = arith.cmpi ne, %1, %c0_i32_0 : i32
    scf.if %2 {
      %c0_10 = arith.constant 0 : index
      %c0_11 = arith.constant 0 : index
      %12 = vector.load %arg4[%c0_10, %c0_11] : memref<1x128xf32, #tpu.memory_space<vmem>>, vector<1x128xf32>
      %13 = vector.shape_cast %12 : vector<1x128xf32> to vector<1x128xf32>
      %14 = vector.broadcast %13 : vector<1x128xf32> to vector<8x128xf32>
      %c0_12 = arith.constant 0 : index
      %c0_13 = arith.constant 0 : index
      %15 = vector.load %arg6[%c0_12, %c0_13] : memref<8x128xf32, #tpu.memory_space<vmem>>, vector<8x128xf32>
      tpu.vector_store %arg6[%c0_12, %c0_13], %14 {strides = array<i32>} : memref<8x128xf32, #tpu.memory_space<vmem>>, vector<8x128xf32>,
    } else {
    }
    %c0 = arith.constant 0 : index
    %c0_1 = arith.constant 0 : index
    %3 = vector.load %arg6[%c0, %c0_1] : memref<8x128xf32, #tpu.memory_space<vmem>>, vector<8x128xf32>
    %c0_2 = arith.constant 0 : index
    %c0_3 = arith.constant 0 : index
    %4 = vector.load %arg2[%c0_2, %c0_3] : memref<8x128xf32, #tpu.memory_space<vmem>>, vector<8x128xf32>
    %c0_4 = arith.constant 0 : index
    %c0_5 = arith.constant 0 : index
    %5 = vector.load %arg3[%c0_4, %c0_5] : memref<128x128xf32, #tpu.memory_space<vmem>>, vector<128x128xf32>
    %cst = arith.constant dense<0.000000e+00> : vector<8x128xf32>
    %6 = tpu.matmul %4, %5, %cst {dimension_numbers = #tpu.dot_dimension_numbers<[1], [0], [0], [1], [0, 0, 1, 1], [], []>, precision = #tpu.contract_precision<fp32>} : vector<8x128xf32>, vector<128x128xf32>, vector<8x128xf32> -> vector<8x128xf32>
    %7 = arith.addf %3, %6 : vector<8x128xf32>
    %c0_6 = arith.constant 0 : index
    %c0_7 = arith.constant 0 : index
    %8 = vector.load %arg6[%c0_6, %c0_7] : memref<8x128xf32, #tpu.memory_space<vmem>>, vector<8x128xf32>
    tpu.vector_store %arg6[%c0_6, %c0_7], %7 {strides = array<i32>} : memref<8x128xf32, #tpu.memory_space<vmem>>, vector<8x128xf32>,
    %c0_i32_8 = arith.constant 0 : i32
    %9 = arith.cmpi eq, %arg1, %c0_i32_8 : i32
    %10 = arith.extui %9 : i1 to i32
    %c0_i32_9 = arith.constant 0 : i32
    %11 = arith.cmpi ne, %10, %c0_i32_9 : i32
    scf.if %11 {
      %c0_10 = arith.constant 0 : index
      %c0_11 = arith.constant 0 : index
      %12 = vector.load %arg6[%c0_10, %c0_11] : memref<8x128xf32, #tpu.memory_space<vmem>>, vector<8x128xf32>
      %c0_12 = arith.constant 0 : index
      %c0_13 = arith.constant 0 : index
      %13 = vector.load %arg5[%c0_12, %c0_13] : memref<8x128xf32, #tpu.memory_space<vmem>>, vector<8x128xf32>
      tpu.vector_store %arg5[%c0_12, %c0_13], %12 {strides = array<i32>} : memref<8x128xf32, #tpu.memory_space<vmem>>, vector<8x128xf32>,
    } else {
    }
    return
  }
  func.func @transform_0(%arg0: i32, %arg1: i32) -> (i32, i32) {
    %c0_i32 = arith.constant 0 : i32
    return %arg0, %arg1 : i32, i32
  }
  func.func @transform_1(%arg0: i32, %arg1: i32) -> (i32, i32) {
    %c0_i32 = arith.constant 0 : i32
    %c0_i32_0 = arith.constant 0 : i32
    return %arg1, %c0_i32 : i32, i32
  }
  func.func @transform_2(%arg0: i32, %arg1: i32) -> (i32, i32) {
    %c0_i32 = arith.constant 0 : i32
    %c0_i32_0 = arith.constant 0 : i32
    %c0_i32_1 = arith.constant 0 : i32
    return %c0_i32, %c0_i32_0 : i32, i32
  }
  func.func @transform_3(%arg0: i32, %arg1: i32) -> (i32, i32) {
    %c0_i32 = arith.constant 0 : i32
    %c0_i32_0 = arith.constant 0 : i32
    return %arg0, %c0_i32 : i32, i32
  }
}

</mosaic_0001>

<bundles_post_ra>
// kernel: tpu_custom_call.1
= control target key start
LH: loop header
LB: loop body
LE: loop exit
PB: predicated region body
PF: predicated region fallthrough
CT: control target
= control target key end

     0   :  { %8 = vsyncpa [#allocation4], 0  ;;  %s1605_s0 = inlined_call_operand.hbm [shape: f32[8,128], index: 0, kind: input, shape index: {}]   ;;  %s1606_s1 = inlined_call_operand.hbm [shape: f32[128,128], index: 1, kind: input, shape index: {}]   ;;  %s1607_s2 = inlined_call_operand.vmem [shape: f32[1,128], index: 2, kind: input, shape index: {}]   ;;  %s1608_s3 = inlined_call_operand.hbm [shape: f32[8,128], index: 3, kind: output, shape index: {}]  }
   0x1   :  { %9 = vsyncpa [#allocation7], 0 }
   0x2   :  { %10 = vsyncpa [#allocation5], 0  ;;  %s1272_s12 = smov [#allocation3]   ;;  %s1273_s14 = smov [#allocation6]  }
   0x3   :  { %s17_s13 = sshll.u32 %s1272_s12, 4  ;;  %s26_s15 = sshll.u32 %s1273_s14, 4  ;;  %s18_s13 = int_to_ptr.vmem [resolvable:$true] %s17_s13  ;;  %s1300_s15 = int_to_ptr.vmem [resolvable:$true] %s26_s15 }
   0x4   :  { %s1200_s18 = scalar_lea.hbm %s1605_s0, 128 }
   0x5   :  { %p1201_p0 = scmp.ne.s32.totalorder %s1605_s0, %s1200_s18  ;;  %p1204_p1 = scmp.lt.u32.totalorder %s1200_s18, %s1605_s0 }
   0x7   :  { %p1206_p2 = pnand %p1204_p1, %p1201_p0 }
   0x9   :  { %1209 = shalt.err (!%p1206_p2)
}
   0xa   :  { %s1210_s23 = scalar_lea.vmem %s18_s13, 128  ;;  %p1215_p4 = scmp.lt.s32.totalorder %s18_s13, %s18_s13 }
   0xb   :  { %p1211_p3 = scmp.ne.s32.totalorder %s18_s13, %s1210_s23  ;;  %p1216_p5 = scmp.lt.s32.totalorder %s1210_s23, %s1210_s23 }
   0xd   :  { %p1217_p6 = por %p1216_p5, %p1215_p4 }
   0xf   :  { %p1218_p7 = pnand %p1217_p6, %p1211_p3 }
  0x11   :  { %1221 = shalt.err (!%p1218_p7)
}
  0x12   :  { %20 = dma.hbm_to_vmem [thread:$0]  %s1605_s0, 128, %s18_s13, [#allocation4]  }
  0x13   :  { %s1222_s28 = scalar_lea.hbm %s1606_s1, 2048 }
  0x14   :  { %p1223_p8 = scmp.ne.s32.totalorder %s1606_s1, %s1222_s28  ;;  %p1226_p9 = scmp.lt.u32.totalorder %s1222_s28, %s1606_s1 }
  0x16   :  { %p1228_p10 = pnand %p1226_p9, %p1223_p8 }
  0x18   :  { %1231 = shalt.err (!%p1228_p10)
}
  0x19   :  { %s1232_s6 = scalar_lea.vmem %s1300_s15, 2048  ;;  %p1237_p12 = scmp.lt.s32.totalorder %s1300_s15, %s1300_s15 }
  0x1a   :  { %p1233_p11 = scmp.ne.s32.totalorder %s1300_s15, %s1232_s6  ;;  %p1238_p13 = scmp.lt.s32.totalorder %s1232_s6, %s1232_s6 }
  0x1c   :  { %p1239_p0 = por %p1238_p13, %p1237_p12 }
  0x1e   :  { %p1240_p1 = pnand %p1239_p0, %p1233_p11 }
  0x20   :  { %1243 = shalt.err (!%p1240_p1)
}
  0x21   :  { %s1274_s0 = smov 128   ;;  %s1275_s7 = smov 8  }
  0x22   :  { %32 = dma.hbm_to_vmem [thread:$0]  %s1606_s1, 2048, %s1300_s15, [#allocation7], %s1274_s0, %s1274_s0, %s1275_s7  }
  0x23   :  { %1266 = dma.done.wait [#allocation4], 128  }
  0x24   :  { %1267 = vsyncadd [#allocation4], 4294967168 }
  0x25   :  { %1268 = dma.done.wait [#allocation7], 2048  }
  0x26   :  { %1269 = vsyncadd [#allocation7], 4294965248  ;;  %v1276_v0 = vmov 0.0|0.0   ;;  %vm1277_vm0 = vmmov 0   ;;  %v1278_v1 = vmov 0.0   ;;  %v55_v2 = vld [vmem:[#allocation6] sm:$0xff] }
  0x27   :  { %1048 = vmatprep.subr.bf16.mxu0 %v1276_v0  ;;  %1072 = vmatprep.subr.bf16.mxu1 %v1276_v0  ;;  %v56_v3 = vld [vmem:[#allocation6 + $0x8] sm:$0xff]  ;;  %v57_v4 = vld [vmem:[#allocation6 + $0x10] sm:$0xff]  ;;  %v72_v5 = vand.u32 4294901760, %v55_v2  ;;  %v58_v7 = vld [vmem:[#allocation6 + $0x18] sm:$0xff]  ;;  %s1279_s11 = smov [#allocation8]  }
  0x28   :  { %870 = vmatprep.mubr.msk.f32.mxu0 %vm1277_vm0, %v1278_v1  ;;  %905 = vmatprep.mubr.msk.f32.mxu1 %vm1277_vm0, %v1278_v1  ;;  %v75_v6 = vand.u32 4294901760, %v56_v3  ;;  %v78_v8 = vand.u32 4294901760, %v57_v4  ;;  %v59_v9 = vld [vmem:[#allocation6 + $0x20] sm:$0xff]  ;;  %v60_v10 = vld [vmem:[#allocation6 + $0x28] sm:$0xff]  ;;  %v81_v11 = vand.u32 4294901760, %v58_v7  ;;  %v61_v14 = vld [vmem:[#allocation6 + $0x30] sm:$0xff] }
  0x29   :  { %v84_v12 = vand.u32 4294901760, %v59_v9  ;;  %v87_v13 = vand.u32 4294901760, %v60_v10  ;;  %v1339_v16 = vsub.f32 %v55_v2, %v72_v5  ;;  %v62_v19 = vld [vmem:[#allocation6 + $0x38] sm:$0xff]  ;;  %v63_v20 = vld [vmem:[#allocation6 + $0x40] sm:$0xff]  ;;  %v90_v26 = vand.u32 4294901760, %v61_v14  ;;  %v64_v27 = vld [vmem:[#allocation6 + $0x48] sm:$0xff] }
  0x2a   :  { %v1337_v15 = vpack.c.bf16 %v75_v6, %v72_v5  ;;  %v1341_v17 = vsub.f32 %v56_v3, %v75_v6  ;;  %v1343_v18 = vsub.f32 %v57_v4, %v78_v8  ;;  %v1345_v21 = vpack.c.bf16 %v81_v11, %v78_v8  ;;  %v65_v40 = vld [vmem:[#allocation6 + $0x50] sm:$0xff]  ;;  %v66_v41 = vld [vmem:[#allocation6 + $0x58] sm:$0xff]  ;;  %v67_v50 = vld [vmem:[#allocation6 + $0x60] sm:$0xff]  ;;  %s725_s12 = sshll.u32 %s1279_s11, 4  ;;  %s726_s12 = int_to_ptr.vmem [resolvable:$true] %s725_s12 }
  0x2b   :  { %v1347_v22 = vsub.f32 %v58_v7, %v81_v11  ;;  %v1350_v23 = vsub.f32 %v59_v9, %v84_v12  ;;  %v165_v24 = vand.u32 4294901760, %v1339_v16  ;;  %v93_v28 = vand.u32 4294901760, %v62_v19  ;;  %v68_v59 = vld [vmem:[#allocation6 + $0x68] sm:$0xff]  ;;  %v69_v2 = vld [vmem:[#allocation6 + $0x70] sm:$0xff]  ;;  %v70_v7 = vld [vmem:[#allocation6 + $0x78] sm:$0xff]  ;;  %s1244_s13 = scalar_lea.vmem %s726_s12, 128  ;;  %p1249_p3 = scmp.lt.s32.totalorder %s726_s12, %s726_s12 }
  0x2c   :  { %1050 = vmatpush3.bf16.msra.mxu0 %v1337_v15  ;;  %v172_v25 = vand.u32 4294901760, %v1341_v17  ;;  %v179_v29 = vand.u32 4294901760, %v1343_v18  ;;  %v96_v31 = vand.u32 4294901760, %v63_v20  ;;  %v1357_v32 = vsub.f32 %v60_v10, %v87_v13  ;;  %p1245_p2 = scmp.ne.s32.totalorder %s726_s12, %s1244_s13  ;;  %p1250_p4 = scmp.lt.s32.totalorder %s1244_s13, %s1244_s13 }
  0x2d   :  { %1051 = vmatprep.subr.bf16.mxu0 %v1276_v0  ;;  %v186_v30 = vand.u32 4294901760, %v1347_v22  ;;  %v166_v33 = vsub.f32 %v1339_v16, %v165_v24  ;;  %v1365_v35 = vsub.f32 %v61_v14, %v90_v26  ;;  %v1367_v36 = vsub.f32 %v62_v19, %v93_v28 }
  0x2e   :  { %v173_v34 = vsub.f32 %v1341_v17, %v172_v25  ;;  %v180_v37 = vsub.f32 %v1343_v18, %v179_v29  ;;  %v99_v39 = vand.u32 4294901760, %v64_v27  ;;  %v1376_v42 = vpack.c.bf16 %v87_v13, %v84_v12  ;;  %p1251_p5 = por %p1250_p4, %p1249_p3 }
  0x2f   :  { %v187_v38 = vsub.f32 %v1347_v22, %v186_v30  ;;  %v167_v43 = vand.u32 4294901760, %v166_v33  ;;  %v1378_v45 = vpack.c.bf16 %v93_v28, %v90_v26  ;;  %v1381_v48 = vsub.f32 %v63_v20, %v96_v31 }
  0x30   :  { %1053 = vmatpush3.bf16.msra.mxu0 %v1345_v21  ;;  %v174_v44 = vand.u32 4294901760, %v173_v34  ;;  %v181_v46 = vand.u32 4294901760, %v180_v37  ;;  %v193_v49 = vand.u32 4294901760, %v1350_v23  ;;  %v200_v52 = vand.u32 4294901760, %v1357_v32  ;;  %p1252_p6 = pnand %p1251_p5, %p1245_p2 }
  0x31   :  { %1054 = vmatprep.subr.bf16.mxu0 %v1276_v0  ;;  %v188_v47 = vand.u32 4294901760, %v187_v38  ;;  %v102_v53 = vand.u32 4294901760, %v65_v40  ;;  %v105_v54 = vand.u32 4294901760, %v66_v41  ;;  %v1385_v55 = vsub.f32 %v64_v27, %v99_v39 }
  0x32   :  { %v1073_v51 = vpack.c.bf16 %v174_v44, %v167_v43  ;;  %v194_v56 = vsub.f32 %v1350_v23, %v193_v49  ;;  %v207_v57 = vand.u32 4294901760, %v1365_v35  ;;  %v214_v58 = vand.u32 4294901760, %v1367_v36 }
  0x33   :  { %v1076_v60 = vpack.c.bf16 %v188_v47, %v181_v46  ;;  %v1393_v61 = vpack.c.bf16 %v99_v39, %v96_v31  ;;  %v201_v62 = vsub.f32 %v1357_v32, %v200_v52  ;;  %v108_v63 = vand.u32 4294901760, %v67_v50  ;;  %v54_v31 = vld [vmem:[#allocation3] sm:$0xff] }
  0x34   :  { %1056 = vmatpush3.bf16.msra.mxu0 %v1376_v42  ;;  %1074 = vmatpush3.bf16.msra.mxu1 %v1073_v51  ;;  %v195_v3 = vand.u32 4294901760, %v194_v56  ;;  %v1400_v4 = vsub.f32 %v65_v40, %v102_v53  ;;  %v208_v5 = vsub.f32 %v1365_v35, %v207_v57  ;;  %v215_v6 = vsub.f32 %v1367_v36, %v214_v58 }
  0x35   :  { %1057 = vmatprep.subr.bf16.mxu0 %v1276_v0  ;;  %1075 = vmatprep.subr.bf16.mxu1 %v1276_v0  ;;  %v202_v8 = vand.u32 4294901760, %v201_v62  ;;  %v1408_v9 = vsub.f32 %v66_v41, %v105_v54  ;;  %v111_v10 = vand.u32 4294901760, %v68_v59  ;;  %v221_v11 = vand.u32 4294901760, %v1381_v48 }
  0x36   :  { %v209_v12 = vand.u32 4294901760, %v208_v5  ;;  %v216_v13 = vand.u32 4294901760, %v215_v6  ;;  %v228_v14 = vand.u32 4294901760, %v1385_v55  ;;  %v114_v19 = vand.u32 4294901760, %v69_v2 }
  0x37   :  { %v1079_v20 = vpack.c.bf16 %v202_v8, %v195_v3  ;;  %v1413_v26 = vsub.f32 %v67_v50, %v108_v63  ;;  %v1415_v27 = vsub.f32 %v68_v59, %v111_v10  ;;  %v117_v28 = vand.u32 4294901760, %v70_v7 }
  0x38   :  { %1059 = vmatpush3.bf16.msra.mxu0 %v1378_v45  ;;  %1077 = vmatpush3.bf16.msra.mxu1 %v1076_v60  ;;  %v222_v33 = vsub.f32 %v1381_v48, %v221_v11  ;;  %v229_v34 = vsub.f32 %v1385_v55, %v228_v14  ;;  %v235_v37 = vand.u32 4294901760, %v1400_v4  ;;  %v1426_v38 = vpack.c.bf16 %v105_v54, %v102_v53 }
  0x39   :  { %1060 = vmatprep.subr.bf16.mxu0 %v1276_v0  ;;  %1078 = vmatprep.subr.bf16.mxu1 %v1276_v0  ;;  %v1082_v39 = vpack.c.bf16 %v216_v13, %v209_v12  ;;  %v1428_v40 = vsub.f32 %v69_v2, %v114_v19  ;;  %v242_v41 = vand.u32 4294901760, %v1408_v9  ;;  %v1434_v47 = vand.u32 4294901760, %v54_v31 }
  0x3a   :  { %v223_v43 = vand.u32 4294901760, %v222_v33  ;;  %v230_v44 = vand.u32 4294901760, %v229_v34  ;;  %v236_v46 = vsub.f32 %v1400_v4, %v235_v37  ;;  %v1437_v50 = vsub.f32 %v70_v7, %v117_v28 }
  0x3b   :  { %v243_v51 = vsub.f32 %v1408_v9, %v242_v41  ;;  %v249_v53 = vand.u32 4294901760, %v1413_v26  ;;  %v256_v54 = vand.u32 4294901760, %v1415_v27  ;;  %v1447_v56 = vsub.f32 %v54_v31, %v1434_v47 }
  0x3c   :  { %1062 = vmatpush3.bf16.msra.mxu0 %v1393_v61  ;;  %1080 = vmatpush3.bf16.msra.mxu1 %v1079_v20  ;;  %v1449_v59 = vpack.c.bf16 %v111_v10, %v108_v63  ;;  %v1085_v60 = vpack.c.bf16 %v230_v44, %v223_v43  ;;  %v237_v62 = vand.u32 4294901760, %v236_v46  ;;  %v263_v3 = vand.u32 4294901760, %v1428_v40 }
  0x3d   :  { %1063 = vmatprep.subr.bf16.mxu0 %v1276_v0  ;;  %1081 = vmatprep.subr.bf16.mxu1 %v1276_v0  ;;  %v154_v2 = vand.u32 4294901760, %v1447_v56  ;;  %v244_v5 = vand.u32 4294901760, %v243_v51  ;;  %v250_v6 = vsub.f32 %v1413_v26, %v249_v53  ;;  %v257_v7 = vsub.f32 %v1415_v27, %v256_v54 }
  0x3e   :  { %v270_v63 = vand.u32 4294901760, %v1437_v50  ;;  %v1463_v8 = vpack.c.bf16 %v117_v28, %v114_v19  ;;  %v264_v12 = vsub.f32 %v1428_v40, %v263_v3  ;;  %v1097_v34 = vpack.c.bf16 %v1341_v17, %v1339_v16 }
  0x3f   :  { %v155_v10 = vsub.f32 %v1447_v56, %v154_v2  ;;  %v1088_v13 = vpack.c.bf16 %v244_v5, %v237_v62  ;;  %v251_v20 = vand.u32 4294901760, %v250_v6  ;;  %v258_v31 = vand.u32 4294901760, %v257_v7 }
  0x40   :  { %1065 = vmatpush3.bf16.msra.mxu0 %v1426_v38  ;;  %1083 = vmatpush3.bf16.msra.mxu1 %v1082_v39  ;;  %v271_v33 = vsub.f32 %v1437_v50, %v270_v63  ;;  %v265_v39 = vand.u32 4294901760, %v264_v12  ;;  %v1100_v46 = vpack.c.bf16 %v1347_v22, %v1343_v18  ;;  %v1103_v51 = vpack.c.bf16 %v1357_v32, %v1350_v23 }
  0x41   :  { %1066 = vmatprep.subr.bf16.mxu0 %v1276_v0  ;;  %1084 = vmatprep.subr.bf16.mxu1 %v1276_v0  ;;  %v156_v19 = vand.u32 4294901760, %v155_v10  ;;  %v1091_v28 = vpack.c.bf16 %v258_v31, %v251_v20  ;;  %v1109_v62 = vpack.c.bf16 %v1385_v55, %v1381_v48  ;;  %v1112_v5 = vpack.c.bf16 %v1408_v9, %v1400_v4 }
  0x42   :  { %v272_v43 = vand.u32 4294901760, %v271_v33  ;;  %v1115_v6 = vpack.c.bf16 %v1415_v27, %v1413_v26  ;;  %v1118_v7 = vpack.c.bf16 %v1437_v50, %v1428_v40  ;;  %v1145_v10 = vpack.c.bf16 %v172_v25, %v165_v24 }
  0x43   :  { %v1148_v12 = vpack.c.bf16 %v186_v30, %v179_v29  ;;  %v1151_v16 = vpack.c.bf16 %v200_v52, %v193_v49  ;;  %v1154_v17 = vpack.c.bf16 %v214_v58, %v207_v57  ;;  %v1163_v18 = vpack.c.bf16 %v256_v54, %v249_v53 }
  0x44   :  { %1068 = vmatpush3.bf16.msra.mxu0 %v1449_v59  ;;  %1086 = vmatpush3.bf16.msra.mxu1 %v1085_v60  ;;  %v1094_v44 = vpack.c.bf16 %v272_v43, %v265_v39  ;;  %v1106_v60 = vpack.c.bf16 %v1367_v36, %v1365_v35 }
  0x45   :  { %1069 = vmatprep.subr.bf16.mxu0 %v1276_v0  ;;  %1087 = vmatprep.subr.bf16.mxu1 %v1276_v0 }
  0x48   :  { %1071 = vmatpush3.bf16.msra.mxu0 %v1463_v8  ;;  %1089 = vmatpush3.bf16.msra.mxu1 %v1088_v13 }
  0x49   :  { %1090 = vmatprep.subr.bf16.mxu1 %v1276_v0  ;;  %1096 = vmatprep.subr.bf16.mxu0 %v1276_v0 }
  0x4b   :  { %871 = vmatmul.mubr.f32.vlgmr.msra.gmra.mrb[0].mxu0 %v156_v19 }
  0x4c   :  { %1092 = vmatpush3.bf16.msra.mxu1 %v1091_v28  ;;  %1098 = vmatpush3.bf16.msra.mxu0 %v1097_v34 }
  0x4d   :  { %1093 = vmatprep.subr.bf16.mxu1 %v1276_v0  ;;  %1099 = vmatprep.subr.bf16.mxu0 %v1276_v0 }
  0x4e   :  { %940 = vmatprep.mubr.msk.f32.mxu0 %vm1277_vm0, %v1278_v1 }
  0x50   :  { %1095 = vmatpush3.bf16.msra.mxu1 %v1094_v44  ;;  %1101 = vmatpush3.bf16.msra.mxu0 %v1100_v46 }
  0x51   :  { %1102 = vmatprep.subr.bf16.mxu0 %v1276_v0  ;;  %1120 = vmatprep.subr.bf16.mxu1 %v1276_v0 }
  0x53   :  { %906 = vmatmul.mubr.f32.vlgmr.msra.gmra.mrb[0].mxu1 %v1434_v47 }
  0x54   :  { %1104 = vmatpush3.bf16.msra.mxu0 %v1103_v51  ;;  %1122 = vmatpush3.bf16.msra.mxu1 %v1337_v15 }
  0x55   :  { %1105 = vmatprep.subr.bf16.mxu0 %v1276_v0  ;;  %1123 = vmatprep.subr.bf16.mxu1 %v1276_v0 }
  0x56   :  { %975 = vmatprep.mubr.msk.f32.mxu1 %vm1277_vm0, %v1278_v1 }
  0x58   :  { %1107 = vmatpush3.bf16.msra.mxu0 %v1106_v60  ;;  %1125 = vmatpush3.bf16.msra.mxu1 %v1345_v21 }
  0x59   :  { %1108 = vmatprep.subr.bf16.mxu0 %v1276_v0  ;;  %1126 = vmatprep.subr.bf16.mxu1 %v1276_v0 }
  0x5c   :  { %1110 = vmatpush3.bf16.msra.mxu0 %v1109_v62  ;;  %1128 = vmatpush3.bf16.msra.mxu1 %v1376_v42 }
  0x5d   :  { %1111 = vmatprep.subr.bf16.mxu0 %v1276_v0  ;;  %1129 = vmatprep.subr.bf16.mxu1 %v1276_v0 }
  0x60   :  { %1113 = vmatpush3.bf16.msra.mxu0 %v1112_v5  ;;  %1131 = vmatpush3.bf16.msra.mxu1 %v1378_v45 }
  0x61   :  { %1114 = vmatprep.subr.bf16.mxu0 %v1276_v0  ;;  %1132 = vmatprep.subr.bf16.mxu1 %v1276_v0 }
  0x64   :  { %1116 = vmatpush3.bf16.msra.mxu0 %v1115_v6  ;;  %1134 = vmatpush3.bf16.msra.mxu1 %v1393_v61 }
  0x65   :  { %1117 = vmatprep.subr.bf16.mxu0 %v1276_v0  ;;  %1135 = vmatprep.subr.bf16.mxu1 %v1276_v0 }
  0x68   :  { %1119 = vmatpush3.bf16.msra.mxu0 %v1118_v7  ;;  %1137 = vmatpush3.bf16.msra.mxu1 %v1426_v38 }
  0x69   :  { %1138 = vmatprep.subr.bf16.mxu1 %v1276_v0  ;;  %1144 = vmatprep.subr.bf16.mxu0 %v1276_v0 }
  0x6b   :  { %941 = vmatmul.mubr.f32.vlgmr.msra.gmra.mrb[2].mxu0 %v1447_v56 }
  0x6c   :  { %1140 = vmatpush3.bf16.msra.mxu1 %v1449_v59  ;;  %1146 = vmatpush3.bf16.msra.mxu0 %v1145_v10 }
  0x6d   :  { %1141 = vmatprep.subr.bf16.mxu1 %v1276_v0  ;;  %1147 = vmatprep.subr.bf16.mxu0 %v1276_v0 }
  0x6e   :  { %1010 = vmatprep.mubr.msk.f32.mxu0 %vm1277_vm0, %v1278_v1 }
  0x70   :  { %1143 = vmatpush3.bf16.msra.mxu1 %v1463_v8  ;;  %1149 = vmatpush3.bf16.msra.mxu0 %v1148_v12 }
  0x71   :  { %1150 = vmatprep.subr.bf16.mxu0 %v1276_v0  ;;  %1168 = vmatprep.subr.bf16.mxu1 %v1276_v0 }
  0x73   :  { %976 = vmatmul.mubr.f32.vlgmr.msra.gmra.mrb[2].mxu1 %v154_v2 }
  0x74   :  { %1152 = vmatpush3.bf16.msra.mxu0 %v1151_v16  ;;  %1170 = vmatpush3.bf16.msra.mxu1 %v1337_v15  ;;  %v1157_v15 = vpack.c.bf16 %v228_v14, %v221_v11 }
  0x75   :  { %1153 = vmatprep.subr.bf16.mxu0 %v1276_v0  ;;  %1171 = vmatprep.subr.bf16.mxu1 %v1276_v0 }
  0x76   :  { %1045 = vmatprep.mubr.msk.f32.mxu1 %vm1277_vm0, %v1278_v1  ;;  %v1160_v1 = vpack.c.bf16 %v242_v41, %v235_v37 }
  0x78   :  { %1155 = vmatpush3.bf16.msra.mxu0 %v1154_v17  ;;  %1173 = vmatpush3.bf16.msra.mxu1 %v1345_v21  ;;  %v1166_v21 = vpack.c.bf16 %v270_v63, %v263_v3 }
  0x79   :  { %1156 = vmatprep.subr.bf16.mxu0 %v1276_v0  ;;  %1174 = vmatprep.subr.bf16.mxu1 %v1276_v0 }
  0x7c   :  { %1158 = vmatpush3.bf16.msra.mxu0 %v1157_v15  ;;  %1176 = vmatpush3.bf16.msra.mxu1 %v1376_v42 }
  0x7d   :  { %1159 = vmatprep.subr.bf16.mxu0 %v1276_v0  ;;  %1177 = vmatprep.subr.bf16.mxu1 %v1276_v0 }
  0x80   :  { %1161 = vmatpush3.bf16.msra.mxu0 %v1160_v1  ;;  %1179 = vmatpush3.bf16.msra.mxu1 %v1378_v45 }
  0x81   :  { %1162 = vmatprep.subr.bf16.mxu0 %v1276_v0  ;;  %1180 = vmatprep.subr.bf16.mxu1 %v1276_v0 }
  0x84   :  { %1164 = vmatpush3.bf16.msra.mxu0 %v1163_v18  ;;  %1182 = vmatpush3.bf16.msra.mxu1 %v1393_v61 }
  0x85   :  { %1165 = vmatprep.subr.bf16.mxu0 %v1276_v0  ;;  %1183 = vmatprep.subr.bf16.mxu1 %v1276_v0 }
  0x88   :  { %1167 = vmatpush3.bf16.msra.mxu0 %v1166_v21  ;;  %1185 = vmatpush3.bf16.msra.mxu1 %v1426_v38 }
  0x89   :  { %1186 = vmatprep.subr.bf16.mxu1 %v1276_v0 }
  0x8b   :  { %1011 = vmatmul.mubr.f32.vlgmr.msra.gmra.mrb[4].mxu0 %v1434_v47 }
  0x8c   :  { %1188 = vmatpush3.bf16.msra.mxu1 %v1449_v59 }
  0x8d   :  { %1189 = vmatprep.subr.bf16.mxu1 %v1276_v0  ;;  %v735_v0 = vld [vmem:[%s1607_s2] ss:$0 sm:$0xff] }
  0x90   :  { %1191 = vmatpush3.bf16.msra.mxu1 %v1463_v8 }
  0x93   :  { %1046 = vmatmul.mubr.f32.vlgmr.msra.gmra.mrb[4].mxu1 %v1434_v47 }
 0x11e   :  { %v158_v22 = vpop.f32.mrb[0].mxu0 }
 0x11f   :  { %v872_v23 = vpop.f32.mrb[1].mxu0 }
 0x126   :  { %v309_v24 = vpop.f32.mrb[0].mxu1 }
 0x127   :  { %v310_v25 = vadd.f32 %v309_v24, %v158_v22  ;;  %v907_v29 = vpop.f32.mrb[1].mxu1 }
 0x13e   :  { %v413_v30 = vpop.f32.mrb[2].mxu0 }
 0x13f   :  { %v414_v32 = vadd.f32 %v413_v30, %v310_v25  ;;  %v942_v35 = vpop.f32.mrb[3].mxu0 }
 0x146   :  { %v502_v36 = vpop.f32.mrb[2].mxu1 }
 0x147   :  { %v503_v42 = vadd.f32 %v502_v36, %v414_v32  ;;  %v977_v45 = vpop.f32.mrb[3].mxu1 }
 0x15e   :  { %v621_v48 = vpop.f32.mrb[4].mxu0 }
 0x15f   :  { %v622_v49 = vadd.f32 %v621_v48, %v503_v42  ;;  %v1012_v52 = vpop.f32.mrb[5].mxu0 }
 0x166   :  { %v708_v55 = vpop.f32.mrb[4].mxu1 }
 0x167   :  { %v709_v57 = vadd.f32 %v708_v55, %v622_v49  ;;  %v1047_v58 = vpop.f32.mrb[5].mxu1 }
 0x169   :  { %v712_v61 = vadd.f32 %v735_v0, %v709_v57 }
 0x16b   :  { %718 = vst [vmem:[#allocation8] sm:$0xff] %v712_v61 }
 0x16c   :  { %1255 = shalt.err (!%p1252_p6)
}
 0x16d   :  { %s1256_s16 = scalar_lea.hbm %s1608_s3, 128 }
 0x16e   :  { %p1257_p7 = scmp.ne.s32.totalorder %s1608_s3, %s1256_s16  ;;  %p1260_p8 = scmp.lt.u32.totalorder %s1256_s16, %s1608_s3 }
 0x170   :  { %p1262_p9 = pnand %p1260_p8, %p1257_p7 }
 0x172   :  { %1265 = shalt.err (!%p1262_p9)
}
 0x173   :  { %728 = dma.vmem_to_hbm [thread:$0]  %s726_s12, 128, %s1608_s3, [#allocation5]  }
 0x174   :  { %1270 = dma.done.wait [#allocation5], 128  }
 0x175   :  { %1271 = vsyncadd [#allocation5], 4294967168 }
 0x176   :  { %732 = vsyncpa [#allocation4], 1 }
 0x177   :  { %733 = vsyncpa [#allocation7], 1 }
 0x178   :  { %734 = vsyncpa [#allocation5], 1 }

</bundles_post_ra>
